<compile_context>
chip_gen: v7x
topology: tpu7x:2x2x1
jax: 0.10.0
libtpu: 0.0.40
codegen_flags: <defaults>
</compile_context>

<pallas_src>
import jax
import jax.numpy as jnp
from jax import lax
from jax.experimental import pallas as pl
from jax.experimental.pallas import tpu as pltpu

BN_EPS = 1e-5  # torch.nn.BatchNorm1d default


def model_kernel(x_ref, w1_ref, b1_ref, gamma_ref, beta_ref, w2_ref, b2_ref, o_ref):
    x = x_ref[...]  # (B, 3) f32

    # linear1: (B,3) @ (3,4) + (1,4)
    h = jnp.dot(x, w1_ref[...], preferred_element_type=jnp.float32) + b1_ref[...]

    # BatchNorm1d(4), training-mode forward: per-feature batch mean, biased var.
    # TODO(synk): running_mean/running_var updates are a training-state side
    # effect and do not change the forward output; not materialized here.
    mean = jnp.mean(h, axis=0, keepdims=True)                  # (1, 4)
    centered = h - mean
    var = jnp.mean(centered * centered, axis=0, keepdims=True)  # (1, 4)
    h_bn = centered * lax.rsqrt(var + BN_EPS) * gamma_ref[...] + beta_ref[...]

    # linear2: (B,4) @ (4,5) + (1,5)
    out = jnp.dot(h_bn, w2_ref[...], preferred_element_type=jnp.float32) + b2_ref[...]
    o_ref[...] = out.astype(o_ref.dtype)


@jax.jit
def _forward_pallas(x, w1, b1, gamma, beta, w2, b2):
    vmem = lambda: pl.BlockSpec(memory_space=pltpu.MemorySpace.VMEM)
    return pl.pallas_call(
        model_kernel,
        out_shape=jax.ShapeDtypeStruct((x.shape[0], w2.shape[1]), x.dtype),
        in_specs=[vmem() for _ in range(7)],
        out_specs=vmem(),
    )(x, w1, b1, gamma, beta, w2, b2)


def model_for_test_copy_forward(params, x, model_id):
    """Pallas equivalent of ModelForTestCopy.forward(x) -> (tensor, id)."""
    out = _forward_pallas(
        x,
        params["w1"], params["b1"],
        params["gamma"], params["beta"],
        params["w2"], params["b2"],
    )
    return out, model_id


if __name__ == "__main__":
    key = jax.random.PRNGKey(0)
    ks = jax.random.split(key, 5)

    B = 8  # small batch, sublane-aligned
    x = jax.random.normal(ks[0], (B, 3), dtype=jnp.float32)

    # Deterministic stand-ins for the torch parameters (stored as (in, out)).
    w1 = jax.random.normal(ks[1], (3, 4), dtype=jnp.float32) * 0.5
    b1 = jax.random.normal(ks[2], (1, 4), dtype=jnp.float32) * 0.1
    gamma = jnp.ones((1, 4), dtype=jnp.float32)   # BatchNorm1d default init
    beta = jnp.zeros((1, 4), dtype=jnp.float32)
    w2 = jax.random.normal(ks[3], (4, 5), dtype=jnp.float32) * 0.5
    b2 = jax.random.normal(ks[4], (1, 5), dtype=jnp.float32) * 0.1

    params = dict(w1=w1, b1=b1, gamma=gamma, beta=beta, w2=w2, b2=b2)
    model_id = 7

    out, returned_id = model_for_test_copy_forward(params, x, model_id)
    out = jax.block_until_ready(out)

    # Pure-JAX reference with identical (training-mode BN) semantics.
    h_ref = x @ w1 + b1
    mean_ref = h_ref.mean(axis=0, keepdims=True)
    var_ref = ((h_ref - mean_ref) ** 2).mean(axis=0, keepdims=True)
    bn_ref = (h_ref - mean_ref) / jnp.sqrt(var_ref + BN_EPS) * gamma + beta
    ref = bn_ref @ w2 + b2

    assert out.shape == (B, 5) and out.dtype == jnp.float32
    assert returned_id == model_id
    assert jnp.allclose(out, ref, rtol=1e-5, atol=1e-5), "mismatch vs reference"

    print("KERNEL_OK")
</pallas_src>

<mosaic_0001>
module attributes {stable_mosaic.version = 11 : i64} {
  func.func @model_kernel(%arg0: memref<8x3xf32, #tpu.memory_space<vmem>>, %arg1: memref<3x4xf32, #tpu.memory_space<vmem>>, %arg2: memref<1x4xf32, #tpu.memory_space<vmem>>, %arg3: memref<1x4xf32, #tpu.memory_space<vmem>>, %arg4: memref<1x4xf32, #tpu.memory_space<vmem>>, %arg5: memref<4x5xf32, #tpu.memory_space<vmem>>, %arg6: memref<1x5xf32, #tpu.memory_space<vmem>>, %arg7: memref<8x5xf32, #tpu.memory_space<vmem>>) attributes {dimension_semantics = [], scalar_prefetch = 0 : i64, scratch_operands = 0 : i64, tpu.core_type = #tpu.core_type<tc>} {
    %c0 = arith.constant 0 : index
    %c0_0 = arith.constant 0 : index
    %0 = vector.load %arg0[%c0, %c0_0] : memref<8x3xf32, #tpu.memory_space<vmem>>, vector<8x3xf32>
    %c0_1 = arith.constant 0 : index
    %c0_2 = arith.constant 0 : index
    %1 = vector.load %arg1[%c0_1, %c0_2] : memref<3x4xf32, #tpu.memory_space<vmem>>, vector<3x4xf32>
    %cst = arith.constant dense<0.000000e+00> : vector<8x4xf32>
    %2 = tpu.matmul %0, %1, %cst {dimension_numbers = #tpu.dot_dimension_numbers<[1], [0], [0], [1], [0, 0, 1, 1], [], []>} : vector<8x3xf32>, vector<3x4xf32>, vector<8x4xf32> -> vector<8x4xf32>
    %c0_3 = arith.constant 0 : index
    %c0_4 = arith.constant 0 : index
    %3 = vector.load %arg2[%c0_3, %c0_4] : memref<1x4xf32, #tpu.memory_space<vmem>>, vector<1x4xf32>
    %4 = vector.broadcast %3 : vector<1x4xf32> to vector<8x4xf32>
    %5 = arith.addf %2, %4 : vector<8x4xf32>
    %cst_5 = arith.constant dense<0.000000e+00> : vector<4xf32>
    %6 = vector.multi_reduction <add>, %5, %cst_5 [0] : vector<8x4xf32> to vector<4xf32>
    %7 = vector.shape_cast %6 : vector<4xf32> to vector<1x4xf32>
    %cst_6 = arith.constant 8.000000e+00 : f32
    %8 = vector.broadcast %cst_6 : f32 to vector<1x4xf32>
    %9 = arith.divf %7, %8 : vector<1x4xf32>
    %10 = vector.broadcast %9 : vector<1x4xf32> to vector<8x4xf32>
    %11 = arith.subf %5, %10 : vector<8x4xf32>
    %12 = arith.mulf %11, %11 : vector<8x4xf32>
    %cst_7 = arith.constant dense<0.000000e+00> : vector<4xf32>
    %13 = vector.multi_reduction <add>, %12, %cst_7 [0] : vector<8x4xf32> to vector<4xf32>
    %14 = vector.shape_cast %13 : vector<4xf32> to vector<1x4xf32>
    %cst_8 = arith.constant 8.000000e+00 : f32
    %15 = vector.broadcast %cst_8 : f32 to vector<1x4xf32>
    %16 = arith.divf %14, %15 : vector<1x4xf32>
    %cst_9 = arith.constant 9.99999974E-6 : f32
    %17 = vector.broadcast %cst_9 : f32 to vector<1x4xf32>
    %18 = arith.addf %16, %17 : vector<1x4xf32>
    %19 = math.rsqrt %18 : vector<1x4xf32>
    %20 = vector.broadcast %19 : vector<1x4xf32> to vector<8x4xf32>
    %21 = arith.mulf %11, %20 : vector<8x4xf32>
    %c0_10 = arith.constant 0 : index
    %c0_11 = arith.constant 0 : index
    %22 = vector.load %arg3[%c0_10, %c0_11] : memref<1x4xf32, #tpu.memory_space<vmem>>, vector<1x4xf32>
    %23 = vector.broadcast %22 : vector<1x4xf32> to vector<8x4xf32>
    %24 = arith.mulf %21, %23 : vector<8x4xf32>
    %c0_12 = arith.constant 0 : index
    %c0_13 = arith.constant 0 : index
    %25 = vector.load %arg4[%c0_12, %c0_13] : memref<1x4xf32, #tpu.memory_space<vmem>>, vector<1x4xf32>
    %26 = vector.broadcast %25 : vector<1x4xf32> to vector<8x4xf32>
    %27 = arith.addf %24, %26 : vector<8x4xf32>
    %c0_14 = arith.constant 0 : index
    %c0_15 = arith.constant 0 : index
    %28 = vector.load %arg5[%c0_14, %c0_15] : memref<4x5xf32, #tpu.memory_space<vmem>>, vector<4x5xf32>
    %cst_16 = arith.constant dense<0.000000e+00> : vector<8x5xf32>
    %29 = tpu.matmul %27, %28, %cst_16 {dimension_numbers = #tpu.dot_dimension_numbers<[1], [0], [0], [1], [0, 0, 1, 1], [], []>} : vector<8x4xf32>, vector<4x5xf32>, vector<8x5xf32> -> vector<8x5xf32>
    %c0_17 = arith.constant 0 : index
    %c0_18 = arith.constant 0 : index
    %30 = vector.load %arg6[%c0_17, %c0_18] : memref<1x5xf32, #tpu.memory_space<vmem>>, vector<1x5xf32>
    %31 = vector.broadcast %30 : vector<1x5xf32> to vector<8x5xf32>
    %32 = arith.addf %29, %31 : vector<8x5xf32>
    %c0_19 = arith.constant 0 : index
    %c0_20 = arith.constant 0 : index
    %33 = vector.load %arg7[%c0_19, %c0_20] : memref<8x5xf32, #tpu.memory_space<vmem>>, vector<8x5xf32>
    tpu.vector_store %arg7[%c0_19, %c0_20], %32 {strides = array<i32>} : memref<8x5xf32, #tpu.memory_space<vmem>>, vector<8x5xf32>,
    return
  }
}

</mosaic_0001>

<bundles_post_ra>
// kernel: _forward_pallas.1
= control target key start
LH: loop header
LB: loop body
LE: loop exit
PB: predicated region body
PF: predicated region fallthrough
CT: control target
= control target key end

     0   :  { %vm40_vm0 = vcmask 1042432   ;;  %v305_v2 = vmov 0.0   ;;  %vm306_vm1 = vmmov 0   ;;  %vm36_vm2 = vcmask 23552   ;;  %s384_s0 = inlined_call_operand.vmem [shape: f32[8,3], index: 0, kind: input, shape index: {}]   ;;  %s385_s1 = inlined_call_operand.vmem [shape: f32[3,4], index: 1, kind: input, shape index: {}]   ;;  %s386_s2 = inlined_call_operand.vmem [shape: f32[1,4], index: 2, kind: input, shape index: {}]   ;;  %s387_s3 = inlined_call_operand.vmem [shape: f32[1,4], index: 3, kind: input, shape index: {}]   ;;  %s388_s4 = inlined_call_operand.vmem [shape: f32[1,4], index: 4, kind: input, shape index: {}]   ;;  %s389_s5 = inlined_call_operand.vmem [shape: f32[4,5], index: 5, kind: input, shape index: {}]   ;;  %s390_s6 = inlined_call_operand.vmem [shape: f32[1,5], index: 6, kind: input, shape index: {}]   ;;  %s391_s7 = inlined_call_operand.hbm [shape: f32[8,5], index: 7, kind: output, shape index: {}]  }
   0x1   :  { %v28_v0 = vld [vmem:[%s385_s1] sm:$0x7]  ;;  %266 = vmatprep.subr.mxu0 %v305_v2  ;;  %268 = vmatprep.mubr.msk.f32.mxu0 %vm306_vm1, %v305_v2 }
   0x2   :  { %v27_v1 = vld [vmem:[%s384_s0] sm:$0xff] }
   0x3   :  { %12 = vsyncpa [#allocation3], 0  ;;  %267 = vmatpush3.msk.msra.mxu0 %vm40_vm0, %v28_v0  ;;  %271 = vmatprep.subr.mxu1 %v305_v2  ;;  %v153_v3 = vld [vmem:[%s389_s5] sm:$0xf]  ;;  %vm164_vm3 = vcmask 1043456   ;;  %vm114_vm4 = vcmask 31744  }
   0x4   :  { %269 = vmatmul.mubr.msk.f32.vlgmr.msra.gmra.mrb[0].mxu0 %vm36_vm2, %v27_v1  ;;  %273 = vmatprep.mubr.msk.f32.mxu1 %vm306_vm1, %v305_v2  ;;  %v254_v4 = vld [vmem:[%s386_s2] ss:$0 sm:$0xff]  ;;  %s307_s11 = smov [#allocation2]   ;;  %vm238_vm5 = vcmask 39936  }
   0x5   :  { %272 = vmatpush3.msk.msra.mxu1 %vm164_vm3, %v153_v3  ;;  %v257_v28 = vld [vmem:[%s387_s3] ss:$0 sm:$0xff]  ;;  %s246_s12 = sshll.u32 %s307_s11, 4  ;;  %s247_s12 = int_to_ptr.vmem [resolvable:$true] %s246_s12 }
   0x6   :  { %v258_v30 = vld [vmem:[%s388_s4] ss:$0 sm:$0xff]  ;;  %s281_s3 = scalar_lea.vmem %s247_s12, 128  ;;  %p286_p1 = scmp.lt.s32.totalorder %s247_s12, %s247_s12 }
   0x7   :  { %v259_v33 = vld [vmem:[%s390_s6] ss:$0 sm:$0xff]  ;;  %p282_p0 = scmp.ne.s32.totalorder %s247_s12, %s281_s3  ;;  %p287_p2 = scmp.lt.s32.totalorder %s281_s3, %s281_s3 }
   0x9   :  { %p288_p3 = por %p287_p2, %p286_p1 }
   0xb   :  { %p289_p4 = pnand %p288_p3, %p282_p0 }
  0xd7   :  { %v110_v5 = vpop.f32.mrb[0].mxu0 }
  0xd8   :  { %v111_v6 = vadd.f32 %v254_v4, %v110_v5  ;;  %v270_v7 = vpop.f32.mrb[1].mxu0 }
  0xda   :  { %v115_v8 = vsel %vm114_vm4, %v111_v6, 0.0 }
  0xdb   :  { %v116_v9 = vrot.slane %v115_v8, 4 }
  0xdd   :  { %v117_v10 = vadd.f32 %v116_v9, %v115_v8 }
  0xdf   :  { %v118_v11 = vrot.slane %v117_v10, 2 }
  0xe1   :  { %v119_v12 = vadd.f32 %v118_v11, %v117_v10 }
  0xe3   :  { %v120_v13 = vrot.slane %v119_v12, 1 }
  0xe5   :  { %v121_v14 = vadd.f32 %v120_v13, %v119_v12 }
  0xe7   :  { %v123_v15 = vmul.f32 0.125, %v121_v14 }
  0xe9   :  { %v124_v16 = vsub.f32 %v111_v6, %v123_v15 }
  0xeb   :  { %v125_v17 = vmul.f32 %v124_v16, %v124_v16 }
  0xed   :  { %v126_v18 = vsel %vm114_vm4, %v125_v17, 0.0 }
  0xee   :  { %v127_v19 = vrot.slane %v126_v18, 4 }
  0xf0   :  { %v128_v20 = vadd.f32 %v127_v19, %v126_v18 }
  0xf2   :  { %v129_v21 = vrot.slane %v128_v20, 2 }
  0xf4   :  { %v130_v22 = vadd.f32 %v129_v21, %v128_v20 }
  0xf6   :  { %v131_v23 = vrot.slane %v130_v22, 1 }
  0xf8   :  { %v132_v24 = vadd.f32 %v131_v23, %v130_v22 }
  0xfa   :  { %v133_v25 = vmul.f32 0.125, %v132_v24 }
  0xfc   :  { %v134_v26 = vadd.f32 1e-05, %v133_v25 }
  0xfe   :  { %279 = vrsqrt.f32 %v134_v26 }
 0x108   :  { %v280_v27 = vpop.eup %279 }
 0x109   :  { %v136_v29 = vmul.f32 %v280_v27, %v124_v16 }
 0x10b   :  { %v144_v31 = vmul.f32 %v257_v28, %v136_v29 }
 0x10d   :  { %v152_v32 = vadd.f32 %v258_v30, %v144_v31 }
 0x10f   :  { %274 = vmatmul.mubr.msk.f32.vlgmr.msra.gmra.mrb[0].mxu1 %vm114_vm4, %v152_v32 }
 0x1e2   :  { %v234_v34 = vpop.f32.mrb[0].mxu1 }
 0x1e3   :  { %v235_v35 = vadd.f32 %v259_v33, %v234_v34  ;;  %v275_v36 = vpop.f32.mrb[1].mxu1 }
 0x1e5   :  { %239 = vst.msk [vmem:[#allocation2] sm:$0xff] %vm238_vm5, %v235_v35 }
 0x1e6   :  { %292 = shalt.err (!%p289_p4)
}
 0x1e7   :  { %s293_s14 = scalar_lea.hbm %s391_s7, 128 }
 0x1e8   :  { %p294_p5 = scmp.ne.s32.totalorder %s391_s7, %s293_s14  ;;  %p297_p6 = scmp.lt.u32.totalorder %s293_s14, %s391_s7 }
 0x1ea   :  { %p299_p7 = pnand %p297_p6, %p294_p5 }
 0x1ec   :  { %302 = shalt.err (!%p299_p7)
}
 0x1ed   :  { %249 = dma.vmem_to_hbm [thread:$0]  %s247_s12, 128, %s391_s7, [#allocation3]  }
 0x1ee   :  { %303 = dma.done.wait [#allocation3], 128  }
 0x1ef   :  { %304 = vsyncadd [#allocation3], 4294967168 }
 0x1f0   :  { %253 = vsyncpa [#allocation3], 1 }

</bundles_post_ra>
